<compile_context>
chip_gen: v7x
topology: tpu7x:2x2x1
jax: 0.10.0
libtpu: 0.0.40
codegen_flags: <defaults>
</compile_context>

<pallas_src>
import functools

import jax
import jax.numpy as jnp
from jax.experimental import pallas as pl
from jax.experimental.pallas import tpu as pltpu

LANES = 128
_VMEM_LIMIT_BYTES = 40 * 1024 * 1024  # fits v7x (64 MiB phys) and v5e/v6e (128 MiB)


def _device_kind():
    try:
        return jax.devices()[0].device_kind.lower()
    except Exception:
        return ""


def _num_tensorcores(kind):
    # v7x exposes 2 TensorCores per chip; v5e/v6e have 1.
    return 2 if "v7" in kind else 1


def _default_block_rows(kind):
    # f32: 4 MiB/input/buffer on v6e/v7x, 2 MiB on v5e (smaller scoped VMEM).
    # Multiples of 32 keep the sublane tiling legal for f32/bf16/int8 inputs.
    if "v5" in kind:
        return 4096
    return 8192


def _sigmoid(x):
    # One EUP transcendental (tanh) instead of exp + reciprocal.
    return 0.5 * (jnp.tanh(0.5 * x) + 1.0)


def _dice_kernel(p_ref, t_ref, out_ref, *, rows, n_blocks, inner_n,
                 block_rows, sub, ragged_last, has_phantom):
    """Accumulate per-core vreg-shaped partial sums.

    out_ref block: (1, 2, sub, LANES) f32, resident across the inner grid axis.
      [:, 0] accumulates sum(sigmoid(p) * t)   (intersection)
      [:, 1] accumulates sum(sigmoid(p) + t)   (union)
    """
    c = pl.program_id(0)
    i = pl.program_id(1)

    @pl.when(i == 0)
    def _init():
        out_ref[...] = jnp.zeros_like(out_ref)

    def _partial(x):
        # (block_rows, LANES) -> (sub, LANES): reduce only the extra sublane
        # groups so per-step accumulation is plain VPU tile adds.
        if sub == 1:
            return x.sum(axis=0, keepdims=True)
        return x.reshape(-1, sub, LANES).sum(axis=0)

    def _compute(mask_rows, logical=None):
        probs = _sigmoid(p_ref[...].astype(jnp.float32))
        targs = t_ref[...].astype(jnp.float32)
        if mask_rows:
            # Ragged last block: mask by global row index (no flattened
            # element index -> no int32 overflow for huge inputs).
            row0 = logical * block_rows
            r_ids = jax.lax.broadcasted_iota(jnp.int32, (block_rows, LANES), 0)
            valid = (row0 + r_ids) < rows
            probs = jnp.where(valid, probs, 0.0)
            targs = jnp.where(valid, targs, 0.0)
        out_ref[0, 0, :, :] += _partial(probs * targs)
        out_ref[0, 1, :, :] += _partial(probs + targs)

    if not (ragged_last or has_phantom):
        _compute(False)
        return

    logical = c * inner_n + i          # logical row-block id (pre-clamp)
    n_full = n_blocks - 1 if ragged_last else n_blocks

    @pl.when(logical < n_full)
    def _full():
        _compute(False)

    if ragged_last:
        @pl.when(logical == n_blocks - 1)
        def _tail():
            _compute(True, logical)

    # logical >= n_blocks: phantom block from the core split -> skip all work.


def dice_segmentation_loss(preds, targets, smooth=1e-5, block_rows=None):
    """Pallas implementation of Dice_Segmentation_Loss.forward."""
    assert preds.shape == targets.shape
    total = int(preds.size)

    kind = _device_kind()
    if block_rows is None:
        block_rows = _default_block_rows(kind)

    flat_p = preds.reshape(-1)
    flat_t = targets.reshape(-1)
    rows = total // LANES
    main = rows * LANES

    # <128-element ragged tail handled in plain JAX (no full-array pad copy).
    if main != total:
        tail_p = _sigmoid(flat_p[main:].astype(jnp.float32))
        tail_t = flat_t[main:].astype(jnp.float32)
        tail_inter = jnp.sum(tail_p * tail_t)
        tail_union = jnp.sum(tail_p) + jnp.sum(tail_t)
    else:
        tail_inter = jnp.zeros((), jnp.float32)
        tail_union = jnp.zeros((), jnp.float32)

    if rows == 0:
        dice = (2.0 * tail_inter + smooth) / (tail_union + smooth)
        return (1.0 - dice).astype(jnp.float32)

    # Lane-dense 2-D view of the multiple-of-128 prefix (copy-free reshape
    # when total % 128 == 0, the typical NCHW segmentation case).
    if main == total:
        p2 = flat_p.reshape(rows, LANES)
        t2 = flat_t.reshape(rows, LANES)
    else:
        p2 = flat_p[:main].reshape(rows, LANES)
        t2 = flat_t[:main].reshape(rows, LANES)

    # Tile sizing: large streaming tiles when the input is big; otherwise a
    # single full-extent block (always legal regardless of dtype sublane
    # multiple).
    if rows > block_rows:
        block_rows_eff = block_rows
    else:
        block_rows_eff = rows
    sub = 8 if block_rows_eff % 8 == 0 else 1

    n_blocks = pl.cdiv(rows, block_rows_eff)
    ncores = _num_tensorcores(kind)
    ncores_eff = ncores if n_blocks >= 2 else 1
    inner_n = pl.cdiv(n_blocks, ncores_eff)

    ragged_last = (rows % block_rows_eff) != 0
    has_phantom = (ncores_eff * inner_n) != n_blocks

    def _in_map(c, i):
        # Clamp phantom blocks onto the last real block (compute is skipped
        # for them inside the kernel).
        return (jnp.minimum(c * inner_n + i, n_blocks - 1), 0)

    kernel = functools.partial(
        _dice_kernel, rows=rows, n_blocks=n_blocks, inner_n=inner_n,
        block_rows=block_rows_eff, sub=sub,
        ragged_last=ragged_last, has_phantom=has_phantom)

    def _run(dim_sem):
        return pl.pallas_call(
            kernel,
            out_shape=jax.ShapeDtypeStruct((ncores_eff, 2, sub, LANES),
                                           jnp.float32),
            grid_spec=pltpu.PrefetchScalarGridSpec(
                num_scalar_prefetch=0,
                grid=(ncores_eff, inner_n),
                in_specs=[
                    pl.BlockSpec((block_rows_eff, LANES), _in_map),
                    pl.BlockSpec((block_rows_eff, LANES), _in_map),
                ],
                out_specs=pl.BlockSpec((1, 2, sub, LANES),
                                       lambda c, i: (c, 0, 0, 0)),
            ),
            compiler_params=pltpu.CompilerParams(
                dimension_semantics=dim_sem,
                vmem_limit_bytes=_VMEM_LIMIT_BYTES,
            ),
        )(p2, t2)

    if ncores_eff > 1:
        # v7x: genuinely shard the leading axis across both TensorCores.
        try:
            partials = _run((pltpu.CORE_PARALLEL, pltpu.ARBITRARY))
        except Exception:
            partials = _run(("parallel", "arbitrary"))
    else:
        partials = _run(("parallel", "arbitrary"))

    # Tiny epilogue in plain JAX: one cross-lane reduce + scalar dice math.
    intersection = partials[:, 0].sum() + tail_inter
    union = partials[:, 1].sum() + tail_union
    dice_coefficient = (2.0 * intersection + smooth) / (union + smooth)
    return (1.0 - dice_coefficient).astype(jnp.float32)


def _reference_dice_loss(preds, targets, smooth=1e-5):
    probs = jax.nn.sigmoid(preds.astype(jnp.float32))
    b = probs.shape[0]
    probs = probs.reshape(b, -1)
    targs = targets.astype(jnp.float32).reshape(b, -1)
    intersection = jnp.sum(probs * targs)
    union = jnp.sum(probs) + jnp.sum(targs)
    dice = (2.0 * intersection + smooth) / (union + smooth)
    return 1.0 - dice


if __name__ == "__main__":
    key = jax.random.PRNGKey(0)
    k_p, k_t, k_p2, k_t2, k_p4, k_t4 = jax.random.split(key, 6)

    # 1) Primary test: NCHW logits + binary targets (copy-free fast path).
    preds = jax.random.normal(k_p, (2, 4, 16, 16), dtype=jnp.float32)
    targets = (jax.random.uniform(k_t, (2, 4, 16, 16)) > 0.5).astype(jnp.float32)
    loss = jax.block_until_ready(dice_segmentation_loss(preds, targets))
    ref = _reference_dice_loss(preds, targets)
    assert jnp.allclose(loss, ref, atol=1e-5, rtol=1e-5), (loss, ref)

    # 2) Ragged total (not a multiple of 128): tail summed in plain JAX.
    preds2 = jax.random.normal(k_p2, (2, 3, 30, 20), dtype=jnp.float32)
    targets2 = (jax.random.uniform(k_t2, (2, 3, 30, 20)) > 0.5).astype(jnp.float32)
    loss2 = jax.block_until_ready(dice_segmentation_loss(preds2, targets2))
    ref2 = _reference_dice_loss(preds2, targets2)
    assert jnp.allclose(loss2, ref2, atol=1e-5, rtol=1e-5), (loss2, ref2)

    # 3) Forced small tiles: exercises the ragged-last-block kernel path
    #    (and the 2-core split on v7x).
    loss3 = jax.block_until_ready(
        dice_segmentation_loss(preds2, targets2, block_rows=8))
    assert jnp.allclose(loss3, ref2, atol=1e-5, rtol=1e-5), (loss3, ref2)

    # 4) Odd block count: exercises ragged block + phantom-block skip (v7x).
    preds4 = jax.random.normal(k_p4, (5, 8, 128), dtype=jnp.float32)
    targets4 = (jax.random.uniform(k_t4, (5, 8, 128)) > 0.5).astype(jnp.float32)
    loss4 = jax.block_until_ready(
        dice_segmentation_loss(preds4, targets4, block_rows=16))
    ref4 = _reference_dice_loss(preds4, targets4)
    assert jnp.allclose(loss4, ref4, atol=1e-5, rtol=1e-5), (loss4, ref4)

    # 5) Narrow dtype path (halves HBM traffic): bf16 preds / bf16 targets,
    #    cast to f32 inside the kernel.
    loss5 = jax.block_until_ready(
        dice_segmentation_loss(preds.astype(jnp.bfloat16),
                               targets.astype(jnp.bfloat16)))
    ref5 = _reference_dice_loss(preds.astype(jnp.bfloat16),
                                targets.astype(jnp.bfloat16))
    assert jnp.allclose(loss5, ref5, atol=1e-5, rtol=1e-5), (loss5, ref5)

    print("KERNEL_OK")
</pallas_src>

<mosaic_0001>
module attributes {stable_mosaic.version = 11 : i64} {
  func.func @_dice_kernel(%arg0: i32, %arg1: i32, %arg2: memref<16x128xf32, #tpu.memory_space<vmem>>, %arg3: memref<16x128xf32, #tpu.memory_space<vmem>>, %arg4: memref<1x2x8x128xf32, #tpu.memory_space<vmem>>) attributes {dimension_semantics = [#tpu.dimension_semantics<parallel>, #tpu.dimension_semantics<arbitrary>], iteration_bounds = array<i64: 1, 1>, scalar_prefetch = 0 : i64, scratch_operands = 0 : i64, tpu.core_type = #tpu.core_type<tc>, window_params = [{transform_indices = @transform_0, window_bounds = array<i64: 16, 128>}, {transform_indices = @transform_1, window_bounds = array<i64: 16, 128>}, {transform_indices = @transform_2, window_bounds = array<i64: 1, 2, 8, 128>}]} {
    %c0_i32 = arith.constant 0 : i32
    %0 = arith.cmpi eq, %arg1, %c0_i32 : i32
    %1 = arith.extui %0 : i1 to i32
    %c0_i32_0 = arith.constant 0 : i32
    %2 = arith.cmpi ne, %1, %c0_i32_0 : i32
    scf.if %2 {
      %cst_23 = arith.constant 0.000000e+00 : f32
      %30 = vector.broadcast %cst_23 : f32 to vector<1x2x8x128xf32>
      %c0_24 = arith.constant 0 : index
      %c0_25 = arith.constant 0 : index
      %c0_26 = arith.constant 0 : index
      %c0_27 = arith.constant 0 : index
      %31 = vector.load %arg4[%c0_24, %c0_25, %c0_26, %c0_27] : memref<1x2x8x128xf32, #tpu.memory_space<vmem>>, vector<1x2x8x128xf32>
      tpu.vector_store %arg4[%c0_24, %c0_25, %c0_26, %c0_27], %30 {strides = array<i32>} : memref<1x2x8x128xf32, #tpu.memory_space<vmem>>, vector<1x2x8x128xf32>,
    } else {
    }
    %c0 = arith.constant 0 : index
    %c0_1 = arith.constant 0 : index
    %3 = vector.load %arg2[%c0, %c0_1] : memref<16x128xf32, #tpu.memory_space<vmem>>, vector<16x128xf32>
    %cst = arith.constant 5.000000e-01 : f32
    %4 = vector.broadcast %cst : f32 to vector<16x128xf32>
    %5 = arith.mulf %4, %3 : vector<16x128xf32>
    %6 = math.tanh %5 : vector<16x128xf32>
    %cst_2 = arith.constant 1.000000e+00 : f32
    %7 = vector.broadcast %cst_2 : f32 to vector<16x128xf32>
    %8 = arith.addf %6, %7 : vector<16x128xf32>
    %cst_3 = arith.constant 5.000000e-01 : f32
    %9 = vector.broadcast %cst_3 : f32 to vector<16x128xf32>
    %10 = arith.mulf %9, %8 : vector<16x128xf32>
    %c0_4 = arith.constant 0 : index
    %c0_5 = arith.constant 0 : index
    %11 = vector.load %arg3[%c0_4, %c0_5] : memref<16x128xf32, #tpu.memory_space<vmem>>, vector<16x128xf32>
    %c0_6 = arith.constant 0 : index
    %c0_7 = arith.constant 0 : index
    %c0_8 = arith.constant 0 : index
    %c0_9 = arith.constant 0 : index
    %12 = vector.load %arg4[%c0_6, %c0_7, %c0_8, %c0_9] : memref<1x2x8x128xf32, #tpu.memory_space<vmem>>, vector<1x1x8x128xf32>
    %13 = vector.shape_cast %12 : vector<1x1x8x128xf32> to vector<8x128xf32>
    %14 = arith.mulf %10, %11 : vector<16x128xf32>
    %15 = vector.shape_cast %14 : vector<16x128xf32> to vector<2x8x128xf32>
    %cst_10 = arith.constant dense<0.000000e+00> : vector<8x128xf32>
    %16 = vector.multi_reduction <add>, %15, %cst_10 [0] : vector<2x8x128xf32> to vector<8x128xf32>
    %17 = arith.addf %13, %16 : vector<8x128xf32>
    %c0_11 = arith.constant 0 : index
    %c0_12 = arith.constant 0 : index
    %c0_13 = arith.constant 0 : index
    %c0_14 = arith.constant 0 : index
    %18 = vector.load %arg4[%c0_11, %c0_12, %c0_13, %c0_14] : memref<1x2x8x128xf32, #tpu.memory_space<vmem>>, vector<1x1x8x128xf32>
    %19 = vector.shape_cast %18 : vector<1x1x8x128xf32> to vector<8x128xf32>
    %20 = vector.shape_cast %17 : vector<8x128xf32> to vector<1x1x8x128xf32>
    tpu.vector_store %arg4[%c0_11, %c0_12, %c0_13, %c0_14], %20 {strides = array<i32>} : memref<1x2x8x128xf32, #tpu.memory_space<vmem>>, vector<1x1x8x128xf32>,
    %c0_15 = arith.constant 0 : index
    %c1 = arith.constant 1 : index
    %c0_16 = arith.constant 0 : index
    %c0_17 = arith.constant 0 : index
    %21 = vector.load %arg4[%c0_15, %c1, %c0_16, %c0_17] : memref<1x2x8x128xf32, #tpu.memory_space<vmem>>, vector<1x1x8x128xf32>
    %22 = vector.shape_cast %21 : vector<1x1x8x128xf32> to vector<8x128xf32>
    %23 = arith.addf %10, %11 : vector<16x128xf32>
    %24 = vector.shape_cast %23 : vector<16x128xf32> to vector<2x8x128xf32>
    %cst_18 = arith.constant dense<0.000000e+00> : vector<8x128xf32>
    %25 = vector.multi_reduction <add>, %24, %cst_18 [0] : vector<2x8x128xf32> to vector<8x128xf32>
    %26 = arith.addf %22, %25 : vector<8x128xf32>
    %c0_19 = arith.constant 0 : index
    %c1_20 = arith.constant 1 : index
    %c0_21 = arith.constant 0 : index
    %c0_22 = arith.constant 0 : index
    %27 = vector.load %arg4[%c0_19, %c1_20, %c0_21, %c0_22] : memref<1x2x8x128xf32, #tpu.memory_space<vmem>>, vector<1x1x8x128xf32>
    %28 = vector.shape_cast %27 : vector<1x1x8x128xf32> to vector<8x128xf32>
    %29 = vector.shape_cast %26 : vector<8x128xf32> to vector<1x1x8x128xf32>
    tpu.vector_store %arg4[%c0_19, %c1_20, %c0_21, %c0_22], %29 {strides = array<i32>} : memref<1x2x8x128xf32, #tpu.memory_space<vmem>>, vector<1x1x8x128xf32>,
    return
  }
  func.func @transform_0(%arg0: i32, %arg1: i32) -> (i32, i32) {
    %c1_i32 = arith.constant 1 : i32
    %0 = arith.muli %arg0, %c1_i32 : i32
    %1 = arith.addi %0, %arg1 : i32
    %c0_i32 = arith.constant 0 : i32
    %2 = arith.minsi %1, %c0_i32 : i32
    %c0_i32_0 = arith.constant 0 : i32
    %c0_i32_1 = arith.constant 0 : i32
    return %2, %c0_i32_0 : i32, i32
  }
  func.func @transform_1(%arg0: i32, %arg1: i32) -> (i32, i32) {
    %c1_i32 = arith.constant 1 : i32
    %0 = arith.muli %arg0, %c1_i32 : i32
    %1 = arith.addi %0, %arg1 : i32
    %c0_i32 = arith.constant 0 : i32
    %2 = arith.minsi %1, %c0_i32 : i32
    %c0_i32_0 = arith.constant 0 : i32
    %c0_i32_1 = arith.constant 0 : i32
    return %2, %c0_i32_0 : i32, i32
  }
  func.func @transform_2(%arg0: i32, %arg1: i32) -> (i32, i32, i32, i32) {
    %c0_i32 = arith.constant 0 : i32
    %c0_i32_0 = arith.constant 0 : i32
    %c0_i32_1 = arith.constant 0 : i32
    %c0_i32_2 = arith.constant 0 : i32
    return %arg0, %c0_i32, %c0_i32_0, %c0_i32_1 : i32, i32, i32, i32
  }
}

</mosaic_0001>

<bundles_post_ra>
// kernel: tpu_custom_call.1
= control target key start
LH: loop header
LB: loop body
LE: loop exit
PB: predicated region body
PF: predicated region fallthrough
CT: control target
= control target key end

     0   :  { %7 = vsyncpa [#allocation3], 0  ;;  %s260_s0 = inlined_call_operand.hbm [shape: f32[16,128], index: 0, kind: input, shape index: {}]   ;;  %s261_s1 = inlined_call_operand.hbm [shape: f32[16,128], index: 1, kind: input, shape index: {}]   ;;  %s262_s2 = inlined_call_operand.hbm [shape: f32[1,2,8,128], index: 2, kind: output, shape index: {}]  }
   0x1   :  { %8 = vsyncpa [#allocation6], 0 }
   0x2   :  { %9 = vsyncpa [#allocation4], 0  ;;  %s195_s9 = smov [#allocation2]   ;;  %s123_s13 = scalar_lea.hbm %s260_s0, 256 }
   0x3   :  { %s21_s10 = sshll.u32 %s195_s9, 4  ;;  %p124_p0 = scmp.ne.s32.totalorder %s260_s0, %s123_s13  ;;  %s22_s10 = int_to_ptr.vmem [resolvable:$true] %s21_s10 }
   0x4   :  { %p127_p1 = scmp.lt.u32.totalorder %s123_s13, %s260_s0 }
   0x6   :  { %p129_p2 = pnand %p127_p1, %p124_p0 }
   0x8   :  { %132 = shalt.err (!%p129_p2)
}
   0x9   :  { %s133_s18 = scalar_lea.vmem %s22_s10, 256  ;;  %p138_p4 = scmp.lt.s32.totalorder %s22_s10, %s22_s10 }
   0xa   :  { %p134_p3 = scmp.ne.s32.totalorder %s22_s10, %s133_s18  ;;  %p139_p5 = scmp.lt.s32.totalorder %s133_s18, %s133_s18 }
   0xc   :  { %p140_p6 = por %p139_p5, %p138_p4 }
   0xe   :  { %p141_p7 = pnand %p140_p6, %p134_p3 }
  0x10   :  { %144 = shalt.err (!%p141_p7)
}
  0x11   :  { %s196_s19 = smov 128   ;;  %s197_s20 = smov 8  }
  0x12   :  { %27 = dma.hbm_to_vmem [thread:$0]  %s260_s0, 256, %s22_s10, [#allocation3], %s196_s19, %s196_s19, %s197_s20  }
  0x13   :  { %s198_s23 = smov [#allocation5]   ;;  %s145_s27 = scalar_lea.hbm %s261_s1, 256 }
  0x14   :  { %s39_s24 = sshll.u32 %s198_s23, 4  ;;  %p146_p8 = scmp.ne.s32.totalorder %s261_s1, %s145_s27  ;;  %s40_s24 = int_to_ptr.vmem [resolvable:$true] %s39_s24 }
  0x15   :  { %p149_p9 = scmp.lt.u32.totalorder %s145_s27, %s261_s1 }
  0x17   :  { %p151_p10 = pnand %p149_p9, %p146_p8 }
  0x19   :  { %154 = shalt.err (!%p151_p10)
}
  0x1a   :  { %s155_s4 = scalar_lea.vmem %s40_s24, 256  ;;  %p160_p12 = scmp.lt.s32.totalorder %s40_s24, %s40_s24 }
  0x1b   :  { %p156_p11 = scmp.ne.s32.totalorder %s40_s24, %s155_s4  ;;  %p161_p13 = scmp.lt.s32.totalorder %s155_s4, %s155_s4 }
  0x1d   :  { %p162_p0 = por %p161_p13, %p160_p12 }
  0x1f   :  { %p163_p1 = pnand %p162_p0, %p156_p11 }
  0x21   :  { %166 = shalt.err (!%p163_p1)
}
  0x22   :  { %45 = dma.hbm_to_vmem [thread:$0]  %s261_s1, 256, %s40_s24, [#allocation6], %s196_s19, %s196_s19, %s197_s20  }
  0x23   :  { %189 = dma.done.wait [#allocation3], 256  }
  0x24   :  { %190 = vsyncadd [#allocation3], 4294967040 }
  0x25   :  { %191 = dma.done.wait [#allocation6], 256  }
  0x26   :  { %192 = vsyncadd [#allocation6], 4294967040  ;;  %v66_v0 = vld [vmem:[#allocation2] sm:$0xff]  ;;  %v67_v1 = vld [vmem:[#allocation2 + $0x8] sm:$0xff]  ;;  %s199_s1 = smov [#allocation7]  }
  0x27   :  { %v68_v2 = vmul.f32 0.5, %v66_v0  ;;  %v69_v3 = vmul.f32 0.5, %v67_v1  ;;  %v76_v8 = vld [vmem:[#allocation5] sm:$0xff]  ;;  %v77_v10 = vld [vmem:[#allocation5 + $0x8] sm:$0xff]  ;;  %s96_s6 = sshll.u32 %s199_s1, 4  ;;  %s97_s6 = int_to_ptr.vmem [resolvable:$true] %s96_s6 }
  0x28   :  { %s167_s7 = scalar_lea.vmem %s97_s6, 256  ;;  %p172_p3 = scmp.lt.s32.totalorder %s97_s6, %s97_s6 }
  0x29   :  { %119 = vtanh.f32 %v68_v2  ;;  %p168_p2 = scmp.ne.s32.totalorder %s97_s6, %s167_s7  ;;  %p173_p4 = scmp.lt.s32.totalorder %s167_s7, %s167_s7 }
  0x2a   :  { %121 = vtanh.f32 %v69_v3 }
  0x2b   :  { %p174_p5 = por %p173_p4, %p172_p3 }
  0x2d   :  { %p175_p6 = pnand %p174_p5, %p168_p2 }
  0x33   :  { %v120_v4 = vpop.eup %119 }
  0x34   :  { %v122_v5 = vpop.eup %121  ;;  %v72_v6 = vadd.f32 1.0, %v120_v4 }
  0x35   :  { %v73_v7 = vadd.f32 1.0, %v122_v5 }
  0x36   :  { %v74_v9 = vmul.f32 0.5, %v72_v6 }
  0x37   :  { %v75_v11 = vmul.f32 0.5, %v73_v7 }
  0x38   :  { %v79_v12 = vmul.f32 %v76_v8, %v74_v9  ;;  %v86_v13 = vadd.f32 %v76_v8, %v74_v9 }
  0x39   :  { %v80_v14 = vmul.f32 %v77_v10, %v75_v11  ;;  %v87_v15 = vadd.f32 %v77_v10, %v75_v11 }
  0x3b   :  { %v81_v16 = vadd.f32 %v80_v14, %v79_v12  ;;  %v88_v17 = vadd.f32 %v87_v15, %v86_v13 }
  0x3d   :  { %83 = vst [vmem:[#allocation7] sm:$0xff] %v81_v16  ;;  %90 = vst [vmem:[#allocation7 + $0x8] sm:$0xff] %v88_v17 }
  0x3e   :  { %178 = shalt.err (!%p175_p6)
}
  0x3f   :  { %s179_s10 = scalar_lea.hbm %s262_s2, 256 }
  0x40   :  { %p180_p7 = scmp.ne.s32.totalorder %s262_s2, %s179_s10  ;;  %p183_p8 = scmp.lt.u32.totalorder %s179_s10, %s262_s2 }
  0x42   :  { %p185_p9 = pnand %p183_p8, %p180_p7 }
  0x44   :  { %188 = shalt.err (!%p185_p9)
}
  0x45   :  { %102 = dma.vmem_to_hbm [thread:$0]  %s97_s6, 256, %s262_s2, [#allocation4], %s196_s19, %s196_s19, %s197_s20  }
  0x46   :  { %193 = dma.done.wait [#allocation4], 256  }
  0x47   :  { %194 = vsyncadd [#allocation4], 4294967040 }
  0x48   :  { %106 = vsyncpa [#allocation3], 1 }
  0x49   :  { %107 = vsyncpa [#allocation6], 1 }
  0x4a   :  { %108 = vsyncpa [#allocation4], 1 }

</bundles_post_ra>
